<compile_context>
chip_gen: v5e
topology: v5e:2x2
jax: 0.10.0
libtpu: 0.0.40
codegen_flags: <defaults>
</compile_context>

<pallas_src>
import functools

import jax
import jax.numpy as jnp
from jax import lax
from jax.experimental import pallas as pl
from jax.experimental.pallas import tpu as pltpu


def _round_up(x, m):
    return (x + m - 1) // m * m


def gma_kernel(xq_ref, xk_ref, wq_ref, wkv_ref, wp_ref, o_ref,
               q_sc, m_sc, l_sc, acc_sc, *, heads, dpad):
    """Grid = (B, q_tiles, kv_tiles); kv is the inner ("arbitrary") axis."""
    ki = pl.program_id(2)
    nk = pl.num_programs(2)
    cdt = xq_ref.dtype

    @pl.when(ki == 0)
    def _init():
        # q projection for all heads (softmax scale folded into wq); keep the
        # result in the input dtype so the MXU operands stay bf16-friendly.
        q_sc[...] = jnp.dot(xq_ref[...], wq_ref[...],
                            preferred_element_type=jnp.float32).astype(q_sc.dtype)
        m_sc[...] = jnp.full(m_sc.shape, -jnp.inf, dtype=m_sc.dtype)
        l_sc[...] = jnp.zeros(l_sc.shape, dtype=l_sc.dtype)
        acc_sc[...] = jnp.zeros(acc_sc.shape, dtype=acc_sc.dtype)

    # Fused k/v projection for this kv tile: one [tk, 2*heads*dpad] MXU matmul,
    # cast exactly once to the compute dtype.
    kv = jnp.dot(xk_ref[...], wkv_ref[...],
                 preferred_element_type=jnp.float32).astype(cdt)

    for h in range(heads):                       # heads is small & static: unrolled
        q_h = q_sc[:, h * dpad:(h + 1) * dpad]                   # [tq, dpad] lane-aligned
        k_h = kv[:, h * dpad:(h + 1) * dpad]                     # [tk, dpad]
        v_h = kv[:, (heads + h) * dpad:(heads + h + 1) * dpad]   # [tk, dpad]

        # q @ k^T without materializing a transpose of k.
        s = lax.dot_general(q_h, k_h, (((1,), (1,)), ((), ())),
                            preferred_element_type=jnp.float32)  # [tq, tk] f32

        m_prev = m_sc[h]                                         # [tq, 1] f32
        m_new = jnp.maximum(m_prev, jnp.max(s, axis=-1, keepdims=True))
        alpha = jnp.exp(m_prev - m_new)
        p = jnp.exp(s - m_new)                                   # unnormalized probs
        l_sc[h] = alpha * l_sc[h] + jnp.sum(p, axis=-1, keepdims=True)
        acc_sc[h] = alpha * acc_sc[h] + jnp.dot(
            p.astype(cdt), v_h, preferred_element_type=jnp.float32)
        m_sc[h] = m_new

    @pl.when(ki == nk - 1)
    def _finalize():
        # Post-normalize the [tq, dpad] accumulator (not a [tq, tk] matrix) and
        # accumulate the (gamma-scaled) output projection per head.
        proj = None
        for h in range(heads):
            inv_l = pl.reciprocal(l_sc[h], approx=True)          # EUP slot, ~free
            out_h = (acc_sc[h] * inv_l).astype(cdt)              # [tq, dpad]
            t = jnp.dot(out_h, wp_ref[h], preferred_element_type=jnp.float32)
            proj = t if proj is None else proj + t
        y = xq_ref[...].astype(jnp.float32) + proj               # gamma folded into wp
        o_ref[...] = y.astype(o_ref.dtype)


def gma_forward(x_nchw, wq, wk, wv, wp, gamma, *, heads, dim_head,
                tq=None, tk=None):
    B, C, H, W = x_nchw.shape
    N = H * W
    dt = x_nchw.dtype
    x = jnp.transpose(x_nchw, (0, 2, 3, 1)).reshape(B, N, C)

    def pick(n, pref):
        t = min(pref, _round_up(n, 8))
        while t > 8 and n % t != 0:
            t -= 8
        return t if (t >= 8 and n % t == 0) else n

    tq = pick(N, 128) if tq is None else tq
    tk = pick(N, 128) if tk is None else tk
    assert N % tq == 0 and N % tk == 0 and tq % 8 == 0 and tk % 8 == 0

    dpad = _round_up(dim_head, 128)       # lane-aligned per-head stride
    hdp = heads * dpad
    scale = float(dim_head) ** -0.5

    def pad_heads(w, s=1.0):
        # [heads, C, dim_head] -> [C, heads*dpad], per-head zero-padded to dpad.
        buf = jnp.zeros((heads, C, dpad), jnp.float32)
        buf = buf.at[:, :, :dim_head].set(w.astype(jnp.float32) * s)
        return jnp.transpose(buf, (1, 0, 2)).reshape(C, hdp)

    w_q = pad_heads(wq, scale).astype(dt)                                  # [C, hdp]
    w_kv = jnp.concatenate([pad_heads(wk), pad_heads(wv)], axis=-1).astype(dt)
    # Output projection with gamma folded in; rows beyond dim_head are zero.
    wp_pad = jnp.zeros((heads, dpad, C), jnp.float32)
    wp_pad = wp_pad.at[:, :dim_head, :].set(
        wp.astype(jnp.float32) * gamma.astype(jnp.float32)[0, 0]).astype(dt)

    nq, nk = N // tq, N // tk
    itemsize = jnp.dtype(dt).itemsize

    # Generation-aware scoped-VMEM limit (<= ~80% of physical VMEM).
    try:
        vmem_cap = int(pltpu.get_tpu_info().vmem_capacity_bytes)
    except Exception:
        vmem_cap = 64 * 1024 * 1024
    est = (2 * itemsize * (tq * C + tk * C + tq * C)                       # x/out blocks (2-buf)
           + 2 * itemsize * (C * hdp + C * 2 * hdp + heads * dpad * C)     # weights (2-buf)
           + itemsize * (tq * hdp + tk * 2 * hdp)                          # q scratch + kv temp
           + 4 * (heads * tq * (dpad + 2) + 2 * tq * tk))                  # f32 acc/m/l + s/p
    vmem_limit = int(min(max(4 * est, 16 * 1024 * 1024), int(0.8 * vmem_cap)))

    flops = (2 * B * N * C * hdp                       # q projection
             + 2 * B * nq * N * C * 2 * hdp            # k/v projection (per q tile)
             + 4 * B * heads * N * N * dpad            # q.k^T + p.v
             + 2 * B * N * hdp * C)                    # output projection
    bytes_accessed = itemsize * (B * N * C * (2 + nq)
                                 + B * nq * nk * (C * 3 * hdp + heads * dpad * C))
    cost = pl.CostEstimate(flops=int(flops),
                           transcendentals=int(B * heads * N * N + B * heads * N * nk),
                           bytes_accessed=int(bytes_accessed))

    kernel = functools.partial(gma_kernel, heads=heads, dpad=dpad)
    y = pl.pallas_call(
        kernel,
        out_shape=jax.ShapeDtypeStruct((B, N, C), dt),
        grid_spec=pltpu.PrefetchScalarGridSpec(
            num_scalar_prefetch=0,
            grid=(B, nq, nk),
            in_specs=[
                pl.BlockSpec((pl.Squeezed(), tq, C), lambda b, qi, ki: (b, qi, 0)),  # x (q tile)
                pl.BlockSpec((pl.Squeezed(), tk, C), lambda b, qi, ki: (b, ki, 0)),  # x (kv tile)
                pl.BlockSpec((C, hdp), lambda b, qi, ki: (0, 0)),                    # w_q (scaled)
                pl.BlockSpec((C, 2 * hdp), lambda b, qi, ki: (0, 0)),                # w_kv
                pl.BlockSpec((heads, dpad, C), lambda b, qi, ki: (0, 0, 0)),         # w_p * gamma
            ],
            out_specs=pl.BlockSpec((pl.Squeezed(), tq, C), lambda b, qi, ki: (b, qi, 0)),
            scratch_shapes=[
                pltpu.VMEM((tq, hdp), dt),                    # q (all heads, padded)
                pltpu.VMEM((heads, tq, 1), jnp.float32),      # running max
                pltpu.VMEM((heads, tq, 1), jnp.float32),      # running denominator
                pltpu.VMEM((heads, tq, dpad), jnp.float32),   # running PV accumulator
            ]),
        compiler_params=pltpu.CompilerParams(
            dimension_semantics=("parallel", "parallel", "arbitrary"),
            vmem_limit_bytes=vmem_limit),
        cost_estimate=cost,
    )(x, x, w_q, w_kv, wp_pad)

    return jnp.transpose(y.reshape(B, H, W, C), (0, 3, 1, 2))


def gma_reference(x_nchw, wq, wk, wv, wp, gamma, *, heads, dim_head):
    """Pure-JAX reference for correctness checking."""
    B, C, H, W = x_nchw.shape
    N = H * W
    x = jnp.transpose(x_nchw, (0, 2, 3, 1)).reshape(B, N, C)
    scale = float(dim_head) ** -0.5
    q = jnp.einsum('bnc,hcd->bhnd', x, wq) * scale
    k = jnp.einsum('bnc,hcd->bhnd', x, wk)
    v = jnp.einsum('bnc,hcd->bhnd', x, wv)
    sim = jnp.einsum('bhid,bhjd->bhij', q, k)
    attn = jax.nn.softmax(sim, axis=-1)
    out = jnp.einsum('bhij,bhjd->bhid', attn, v)
    proj = jnp.einsum('bhnd,hdc->bnc', out, wp)
    y = x + gamma[0, 0] * proj
    return jnp.transpose(y.reshape(B, H, W, C), (0, 3, 1, 2))


if __name__ == "__main__":
    B, C, H, W = 2, 32, 8, 8
    heads, dim_head = 2, 16

    key = jax.random.PRNGKey(0)
    kx, kq, kk, kv, kp = jax.random.split(key, 5)
    x = jax.random.normal(kx, (B, C, H, W), jnp.float32)
    # Deterministic synthetic parameters (1x1-conv weights per head).
    wq = 0.1 * jax.random.normal(kq, (heads, C, dim_head), jnp.float32)
    wk = 0.1 * jax.random.normal(kk, (heads, C, dim_head), jnp.float32)
    wv = 0.1 * jax.random.normal(kv, (heads, C, dim_head), jnp.float32)
    wp = 0.1 * jax.random.normal(kp, (heads, dim_head, C), jnp.float32)
    # GMA initializes gamma to 0 (identity); use 0.5 so the attention path is
    # actually exercised in this synthetic test.
    gamma = jnp.full((1, 1), 0.5, jnp.float32)

    y_ref = gma_reference(x, wq, wk, wv, wp, gamma, heads=heads,
                          dim_head=dim_head)

    # f32 path; small q/kv tiles so the online softmax crosses several kv
    # tiles (multi-step flash path is actually exercised).
    y = gma_forward(x, wq, wk, wv, wp, gamma, heads=heads, dim_head=dim_head,
                    tq=32, tk=16)
    jax.block_until_ready(y)
    assert y.shape == (B, C, H, W)
    assert jnp.allclose(y, y_ref, atol=5e-3, rtol=5e-3), "f32 mismatch vs reference"

    # bf16 path (the MXU-friendly production dtype): looser tolerance.
    y_bf = gma_forward(x.astype(jnp.bfloat16), wq.astype(jnp.bfloat16),
                       wk.astype(jnp.bfloat16), wv.astype(jnp.bfloat16),
                       wp.astype(jnp.bfloat16), gamma,
                       heads=heads, dim_head=dim_head, tq=32, tk=16)
    jax.block_until_ready(y_bf)
    assert y_bf.dtype == jnp.bfloat16
    assert jnp.allclose(y_bf.astype(jnp.float32), y_ref, atol=1e-1, rtol=1e-1), \
        "bf16 mismatch vs reference"

    print("KERNEL_OK")
</pallas_src>

<mosaic_0001>
module attributes {stable_mosaic.version = 11 : i64} {
  func.func @gma_kernel(%arg0: i32, %arg1: i32, %arg2: i32, %arg3: memref<1x32x32xf32, #tpu.memory_space<vmem>>, %arg4: memref<1x16x32xf32, #tpu.memory_space<vmem>>, %arg5: memref<32x256xf32, #tpu.memory_space<vmem>>, %arg6: memref<32x512xf32, #tpu.memory_space<vmem>>, %arg7: memref<2x128x32xf32, #tpu.memory_space<vmem>>, %arg8: memref<1x32x32xf32, #tpu.memory_space<vmem>>, %arg9: memref<32x256xf32, #tpu.memory_space<vmem>>, %arg10: memref<2x32x1xf32, #tpu.memory_space<vmem>>, %arg11: memref<2x32x1xf32, #tpu.memory_space<vmem>>, %arg12: memref<2x32x128xf32, #tpu.memory_space<vmem>>) attributes {dimension_semantics = [#tpu.dimension_semantics<parallel>, #tpu.dimension_semantics<parallel>, #tpu.dimension_semantics<arbitrary>], iteration_bounds = array<i64: 2, 2, 4>, scalar_prefetch = 0 : i64, scratch_operands = 4 : i64, tpu.core_type = #tpu.core_type<tc>, window_params = [{transform_indices = @transform_0, window_bounds = array<i64: 1, 32, 32>}, {transform_indices = @transform_1, window_bounds = array<i64: 1, 16, 32>}, {pipeline_mode = #tpu.pipeline_mode<synchronous>, transform_indices = @transform_2, window_bounds = array<i64: 32, 256>}, {pipeline_mode = #tpu.pipeline_mode<synchronous>, transform_indices = @transform_3, window_bounds = array<i64: 32, 512>}, {pipeline_mode = #tpu.pipeline_mode<synchronous>, transform_indices = @transform_4, window_bounds = array<i64: 2, 128, 32>}, {transform_indices = @transform_5, window_bounds = array<i64: 1, 32, 32>}]} {
    %c0_i32 = arith.constant 0 : i32
    %0 = arith.cmpi eq, %arg2, %c0_i32 : i32
    %1 = arith.extui %0 : i1 to i32
    %c0_i32_0 = arith.constant 0 : i32
    %2 = arith.cmpi ne, %1, %c0_i32_0 : i32
    scf.if %2 {
      %c0_52 = arith.constant 0 : index
      %c0_53 = arith.constant 0 : index
      %c0_54 = arith.constant 0 : index
      %80 = vector.load %arg3[%c0_52, %c0_53, %c0_54] : memref<1x32x32xf32, #tpu.memory_space<vmem>>, vector<1x32x32xf32>
      %81 = vector.shape_cast %80 : vector<1x32x32xf32> to vector<32x32xf32>
      %c0_55 = arith.constant 0 : index
      %c0_56 = arith.constant 0 : index
      %82 = vector.load %arg5[%c0_55, %c0_56] : memref<32x256xf32, #tpu.memory_space<vmem>>, vector<32x256xf32>
      %cst_57 = arith.constant dense<0.000000e+00> : vector<32x256xf32>
      %83 = tpu.matmul %81, %82, %cst_57 {dimension_numbers = #tpu.dot_dimension_numbers<[1], [0], [0], [1], [0, 0, 1, 1], [], []>} : vector<32x32xf32>, vector<32x256xf32>, vector<32x256xf32> -> vector<32x256xf32>
      %c0_58 = arith.constant 0 : index
      %c0_59 = arith.constant 0 : index
      %84 = vector.load %arg9[%c0_58, %c0_59] : memref<32x256xf32, #tpu.memory_space<vmem>>, vector<32x256xf32>
      tpu.vector_store %arg9[%c0_58, %c0_59], %83 {strides = array<i32>} : memref<32x256xf32, #tpu.memory_space<vmem>>, vector<32x256xf32>,
      %cst_60 = arith.constant 0xFF800000 : f32
      %85 = vector.broadcast %cst_60 : f32 to vector<2x32x1xf32>
      %c0_61 = arith.constant 0 : index
      %c0_62 = arith.constant 0 : index
      %c0_63 = arith.constant 0 : index
      %86 = vector.load %arg10[%c0_61, %c0_62, %c0_63] : memref<2x32x1xf32, #tpu.memory_space<vmem>>, vector<2x32x1xf32>
      tpu.vector_store %arg10[%c0_61, %c0_62, %c0_63], %85 {strides = array<i32>} : memref<2x32x1xf32, #tpu.memory_space<vmem>>, vector<2x32x1xf32>,
      %cst_64 = arith.constant 0.000000e+00 : f32
      %87 = vector.broadcast %cst_64 : f32 to vector<2x32x1xf32>
      %c0_65 = arith.constant 0 : index
      %c0_66 = arith.constant 0 : index
      %c0_67 = arith.constant 0 : index
      %88 = vector.load %arg11[%c0_65, %c0_66, %c0_67] : memref<2x32x1xf32, #tpu.memory_space<vmem>>, vector<2x32x1xf32>
      tpu.vector_store %arg11[%c0_65, %c0_66, %c0_67], %87 {strides = array<i32>} : memref<2x32x1xf32, #tpu.memory_space<vmem>>, vector<2x32x1xf32>,
      %cst_68 = arith.constant 0.000000e+00 : f32
      %89 = vector.broadcast %cst_68 : f32 to vector<2x32x128xf32>
      %c0_69 = arith.constant 0 : index
      %c0_70 = arith.constant 0 : index
      %c0_71 = arith.constant 0 : index
      %90 = vector.load %arg12[%c0_69, %c0_70, %c0_71] : memref<2x32x128xf32, #tpu.memory_space<vmem>>, vector<2x32x128xf32>
      tpu.vector_store %arg12[%c0_69, %c0_70, %c0_71], %89 {strides = array<i32>} : memref<2x32x128xf32, #tpu.memory_space<vmem>>, vector<2x32x128xf32>,
    } else {
    }
    %c0 = arith.constant 0 : index
    %c0_1 = arith.constant 0 : index
    %c0_2 = arith.constant 0 : index
    %3 = vector.load %arg4[%c0, %c0_1, %c0_2] : memref<1x16x32xf32, #tpu.memory_space<vmem>>, vector<1x16x32xf32>
    %4 = vector.shape_cast %3 : vector<1x16x32xf32> to vector<16x32xf32>
    %c0_3 = arith.constant 0 : index
    %c0_4 = arith.constant 0 : index
    %5 = vector.load %arg6[%c0_3, %c0_4] : memref<32x512xf32, #tpu.memory_space<vmem>>, vector<32x512xf32>
    %cst = arith.constant dense<0.000000e+00> : vector<16x512xf32>
    %6 = tpu.matmul %4, %5, %cst {dimension_numbers = #tpu.dot_dimension_numbers<[1], [0], [0], [1], [0, 0, 1, 1], [], []>} : vector<16x32xf32>, vector<32x512xf32>, vector<16x512xf32> -> vector<16x512xf32>
    %c0_5 = arith.constant 0 : index
    %c0_6 = arith.constant 0 : index
    %7 = vector.load %arg9[%c0_5, %c0_6] : memref<32x256xf32, #tpu.memory_space<vmem>>, vector<32x128xf32>
    %8 = vector.extract_strided_slice %6 {offsets = [0, 0], sizes = [16, 128], strides = [1, 1]} : vector<16x512xf32> to vector<16x128xf32>
    %9 = vector.extract_strided_slice %6 {offsets = [0, 256], sizes = [16, 128], strides = [1, 1]} : vector<16x512xf32> to vector<16x128xf32>
    %cst_7 = arith.constant dense<0.000000e+00> : vector<32x16xf32>
    %10 = tpu.matmul %7, %8, %cst_7 {dimension_numbers = #tpu.dot_dimension_numbers<[1], [1], [0], [0], [0, 0, 1, 0], [], []>} : vector<32x128xf32>, vector<16x128xf32>, vector<32x16xf32> -> vector<32x16xf32>
    %c0_8 = arith.constant 0 : index
    %c0_9 = arith.constant 0 : index
    %c0_10 = arith.constant 0 : index
    %11 = vector.load %arg10[%c0_8, %c0_9, %c0_10] : memref<2x32x1xf32, #tpu.memory_space<vmem>>, vector<1x32x1xf32>
    %12 = vector.shape_cast %11 : vector<1x32x1xf32> to vector<32x1xf32>
    %cst_11 = arith.constant dense<0xFF800000> : vector<32xf32>
    %13 = vector.multi_reduction <maximumf>, %10, %cst_11 [1] : vector<32x16xf32> to vector<32xf32>
    %14 = vector.shape_cast %13 : vector<32xf32> to vector<32x1xf32>
    %15 = arith.maximumf %12, %14 : vector<32x1xf32>
    %16 = arith.subf %12, %15 : vector<32x1xf32>
    %17 = math.exp %16 : vector<32x1xf32>
    %18 = vector.broadcast %15 : vector<32x1xf32> to vector<32x16xf32>
    %19 = arith.subf %10, %18 : vector<32x16xf32>
    %20 = math.exp %19 : vector<32x16xf32>
    %c0_12 = arith.constant 0 : index
    %c0_13 = arith.constant 0 : index
    %c0_14 = arith.constant 0 : index
    %21 = vector.load %arg11[%c0_12, %c0_13, %c0_14] : memref<2x32x1xf32, #tpu.memory_space<vmem>>, vector<1x32x1xf32>
    %22 = vector.shape_cast %21 : vector<1x32x1xf32> to vector<32x1xf32>
    %23 = arith.mulf %17, %22 : vector<32x1xf32>
    %cst_15 = arith.constant dense<0.000000e+00> : vector<32xf32>
    %24 = vector.multi_reduction <add>, %20, %cst_15 [1] : vector<32x16xf32> to vector<32xf32>
    %25 = vector.shape_cast %24 : vector<32xf32> to vector<32x1xf32>
    %26 = arith.addf %23, %25 : vector<32x1xf32>
    %c0_16 = arith.constant 0 : index
    %c0_17 = arith.constant 0 : index
    %c0_18 = arith.constant 0 : index
    %27 = vector.load %arg11[%c0_16, %c0_17, %c0_18] : memref<2x32x1xf32, #tpu.memory_space<vmem>>, vector<1x32x1xf32>
    %28 = vector.shape_cast %27 : vector<1x32x1xf32> to vector<32x1xf32>
    %29 = vector.shape_cast %26 : vector<32x1xf32> to vector<1x32x1xf32>
    tpu.vector_store %arg11[%c0_16, %c0_17, %c0_18], %29 {strides = array<i32>} : memref<2x32x1xf32, #tpu.memory_space<vmem>>, vector<1x32x1xf32>,
    %c0_19 = arith.constant 0 : index
    %c0_20 = arith.constant 0 : index
    %c0_21 = arith.constant 0 : index
    %30 = vector.load %arg12[%c0_19, %c0_20, %c0_21] : memref<2x32x128xf32, #tpu.memory_space<vmem>>, vector<1x32x128xf32>
    %31 = vector.shape_cast %30 : vector<1x32x128xf32> to vector<32x128xf32>
    %32 = vector.broadcast %17 : vector<32x1xf32> to vector<32x128xf32>
    %33 = arith.mulf %32, %31 : vector<32x128xf32>
    %cst_22 = arith.constant dense<0.000000e+00> : vector<32x128xf32>
    %34 = tpu.matmul %20, %9, %cst_22 {dimension_numbers = #tpu.dot_dimension_numbers<[1], [0], [0], [1], [0, 0, 1, 1], [], []>} : vector<32x16xf32>, vector<16x128xf32>, vector<32x128xf32> -> vector<32x128xf32>
    %35 = arith.addf %33, %34 : vector<32x128xf32>
    %c0_23 = arith.constant 0 : index
    %c0_24 = arith.constant 0 : index
    %c0_25 = arith.constant 0 : index
    %36 = vector.load %arg12[%c0_23, %c0_24, %c0_25] : memref<2x32x128xf32, #tpu.memory_space<vmem>>, vector<1x32x128xf32>
    %37 = vector.shape_cast %36 : vector<1x32x128xf32> to vector<32x128xf32>
    %38 = vector.shape_cast %35 : vector<32x128xf32> to vector<1x32x128xf32>
    tpu.vector_store %arg12[%c0_23, %c0_24, %c0_25], %38 {strides = array<i32>} : memref<2x32x128xf32, #tpu.memory_space<vmem>>, vector<1x32x128xf32>,
    %c0_26 = arith.constant 0 : index
    %c0_27 = arith.constant 0 : index
    %c0_28 = arith.constant 0 : index
    %39 = vector.load %arg10[%c0_26, %c0_27, %c0_28] : memref<2x32x1xf32, #tpu.memory_space<vmem>>, vector<1x32x1xf32>
    %40 = vector.shape_cast %39 : vector<1x32x1xf32> to vector<32x1xf32>
    %41 = vector.shape_cast %15 : vector<32x1xf32> to vector<1x32x1xf32>
    tpu.vector_store %arg10[%c0_26, %c0_27, %c0_28], %41 {strides = array<i32>} : memref<2x32x1xf32, #tpu.memory_space<vmem>>, vector<1x32x1xf32>,
    %c0_29 = arith.constant 0 : index
    %c128 = arith.constant 128 : index
    %42 = vector.load %arg9[%c0_29, %c128] : memref<32x256xf32, #tpu.memory_space<vmem>>, vector<32x128xf32>
    %43 = vector.extract_strided_slice %6 {offsets = [0, 128], sizes = [16, 128], strides = [1, 1]} : vector<16x512xf32> to vector<16x128xf32>
    %44 = vector.extract_strided_slice %6 {offsets = [0, 384], sizes = [16, 128], strides = [1, 1]} : vector<16x512xf32> to vector<16x128xf32>
    %cst_30 = arith.constant dense<0.000000e+00> : vector<32x16xf32>
    %45 = tpu.matmul %42, %43, %cst_30 {dimension_numbers = #tpu.dot_dimension_numbers<[1], [1], [0], [0], [0, 0, 1, 0], [], []>} : vector<32x128xf32>, vector<16x128xf32>, vector<32x16xf32> -> vector<32x16xf32>
    %c1 = arith.constant 1 : index
    %c0_31 = arith.constant 0 : index
    %c0_32 = arith.constant 0 : index
    %46 = vector.load %arg10[%c1, %c0_31, %c0_32] : memref<2x32x1xf32, #tpu.memory_space<vmem>>, vector<1x32x1xf32>
    %47 = vector.shape_cast %46 : vector<1x32x1xf32> to vector<32x1xf32>
    %cst_33 = arith.constant dense<0xFF800000> : vector<32xf32>
    %48 = vector.multi_reduction <maximumf>, %45, %cst_33 [1] : vector<32x16xf32> to vector<32xf32>
    %49 = vector.shape_cast %48 : vector<32xf32> to vector<32x1xf32>
    %50 = arith.maximumf %47, %49 : vector<32x1xf32>
    %51 = arith.subf %47, %50 : vector<32x1xf32>
    %52 = math.exp %51 : vector<32x1xf32>
    %53 = vector.broadcast %50 : vector<32x1xf32> to vector<32x16xf32>
    %54 = arith.subf %45, %53 : vector<32x16xf32>
    %55 = math.exp %54 : vector<32x16xf32>
    %c1_34 = arith.constant 1 : index
    %c0_35 = arith.constant 0 : index
    %c0_36 = arith.constant 0 : index
    %56 = vector.load %arg11[%c1_34, %c0_35, %c0_36] : memref<2x32x1xf32, #tpu.memory_space<vmem>>, vector<1x32x1xf32>
    %57 = vector.shape_cast %56 : vector<1x32x1xf32> to vector<32x1xf32>
    %58 = arith.mulf %52, %57 : vector<32x1xf32>
    %cst_37 = arith.constant dense<0.000000e+00> : vector<32xf32>
    %59 = vector.multi_reduction <add>, %55, %cst_37 [1] : vector<32x16xf32> to vector<32xf32>
    %60 = vector.shape_cast %59 : vector<32xf32> to vector<32x1xf32>
    %61 = arith.addf %58, %60 : vector<32x1xf32>
    %c1_38 = arith.constant 1 : index
    %c0_39 = arith.constant 0 : index
    %c0_40 = arith.constant 0 : index
    %62 = vector.load %arg11[%c1_38, %c0_39, %c0_40] : memref<2x32x1xf32, #tpu.memory_space<vmem>>, vector<1x32x1xf32>
    %63 = vector.shape_cast %62 : vector<1x32x1xf32> to vector<32x1xf32>
    %64 = vector.shape_cast %61 : vector<32x1xf32> to vector<1x32x1xf32>
    tpu.vector_store %arg11[%c1_38, %c0_39, %c0_40], %64 {strides = array<i32>} : memref<2x32x1xf32, #tpu.memory_space<vmem>>, vector<1x32x1xf32>,
    %c1_41 = arith.constant 1 : index
    %c0_42 = arith.constant 0 : index
    %c0_43 = arith.constant 0 : index
    %65 = vector.load %arg12[%c1_41, %c0_42, %c0_43] : memref<2x32x128xf32, #tpu.memory_space<vmem>>, vector<1x32x128xf32>
    %66 = vector.shape_cast %65 : vector<1x32x128xf32> to vector<32x128xf32>
    %67 = vector.broadcast %52 : vector<32x1xf32> to vector<32x128xf32>
    %68 = arith.mulf %67, %66 : vector<32x128xf32>
    %cst_44 = arith.constant dense<0.000000e+00> : vector<32x128xf32>
    %69 = tpu.matmul %55, %44, %cst_44 {dimension_numbers = #tpu.dot_dimension_numbers<[1], [0], [0], [1], [0, 0, 1, 1], [], []>} : vector<32x16xf32>, vector<16x128xf32>, vector<32x128xf32> -> vector<32x128xf32>
    %70 = arith.addf %68, %69 : vector<32x128xf32>
    %c1_45 = arith.constant 1 : index
    %c0_46 = arith.constant 0 : index
    %c0_47 = arith.constant 0 : index
    %71 = vector.load %arg12[%c1_45, %c0_46, %c0_47] : memref<2x32x128xf32, #tpu.memory_space<vmem>>, vector<1x32x128xf32>
    %72 = vector.shape_cast %71 : vector<1x32x128xf32> to vector<32x128xf32>
    %73 = vector.shape_cast %70 : vector<32x128xf32> to vector<1x32x128xf32>
    tpu.vector_store %arg12[%c1_45, %c0_46, %c0_47], %73 {strides = array<i32>} : memref<2x32x128xf32, #tpu.memory_space<vmem>>, vector<1x32x128xf32>,
    %c1_48 = arith.constant 1 : index
    %c0_49 = arith.constant 0 : index
    %c0_50 = arith.constant 0 : index
    %74 = vector.load %arg10[%c1_48, %c0_49, %c0_50] : memref<2x32x1xf32, #tpu.memory_space<vmem>>, vector<1x32x1xf32>
    %75 = vector.shape_cast %74 : vector<1x32x1xf32> to vector<32x1xf32>
    %76 = vector.shape_cast %50 : vector<32x1xf32> to vector<1x32x1xf32>
    tpu.vector_store %arg10[%c1_48, %c0_49, %c0_50], %76 {strides = array<i32>} : memref<2x32x1xf32, #tpu.memory_space<vmem>>, vector<1x32x1xf32>,
    %c3_i32 = arith.constant 3 : i32
    %77 = arith.cmpi eq, %arg2, %c3_i32 : i32
    %78 = arith.extui %77 : i1 to i32
    %c0_i32_51 = arith.constant 0 : i32
    %79 = arith.cmpi ne, %78, %c0_i32_51 : i32
    scf.if %79 {
      %c0_52 = arith.constant 0 : index
      %c0_53 = arith.constant 0 : index
      %c0_54 = arith.constant 0 : index
      %80 = vector.load %arg11[%c0_52, %c0_53, %c0_54] : memref<2x32x1xf32, #tpu.memory_space<vmem>>, vector<1x32x1xf32>
      %81 = vector.shape_cast %80 : vector<1x32x1xf32> to vector<32x1xf32>
      %82 = tpu.reciprocal %81 {approx = true} : vector<32x1xf32> -> vector<32x1xf32>
      %c0_55 = arith.constant 0 : index
      %c0_56 = arith.constant 0 : index
      %c0_57 = arith.constant 0 : index
      %83 = vector.load %arg12[%c0_55, %c0_56, %c0_57] : memref<2x32x128xf32, #tpu.memory_space<vmem>>, vector<1x32x128xf32>
      %84 = vector.shape_cast %83 : vector<1x32x128xf32> to vector<32x128xf32>
      %85 = vector.broadcast %82 : vector<32x1xf32> to vector<32x128xf32>
      %86 = arith.mulf %84, %85 : vector<32x128xf32>
      %c0_58 = arith.constant 0 : index
      %c0_59 = arith.constant 0 : index
      %c0_60 = arith.constant 0 : index
      %87 = vector.load %arg7[%c0_58, %c0_59, %c0_60] : memref<2x128x32xf32, #tpu.memory_space<vmem>>, vector<1x128x32xf32>
      %88 = vector.shape_cast %87 : vector<1x128x32xf32> to vector<128x32xf32>
      %cst_61 = arith.constant dense<0.000000e+00> : vector<32x32xf32>
      %89 = tpu.matmul %86, %88, %cst_61 {dimension_numbers = #tpu.dot_dimension_numbers<[1], [0], [0], [1], [0, 0, 1, 1], [], []>} : vector<32x128xf32>, vector<128x32xf32>, vector<32x32xf32> -> vector<32x32xf32>
      %c1_62 = arith.constant 1 : index
      %c0_63 = arith.constant 0 : index
      %c0_64 = arith.constant 0 : index
      %90 = vector.load %arg11[%c1_62, %c0_63, %c0_64] : memref<2x32x1xf32, #tpu.memory_space<vmem>>, vector<1x32x1xf32>
      %91 = vector.shape_cast %90 : vector<1x32x1xf32> to vector<32x1xf32>
      %92 = tpu.reciprocal %91 {approx = true} : vector<32x1xf32> -> vector<32x1xf32>
      %c1_65 = arith.constant 1 : index
      %c0_66 = arith.constant 0 : index
      %c0_67 = arith.constant 0 : index
      %93 = vector.load %arg12[%c1_65, %c0_66, %c0_67] : memref<2x32x128xf32, #tpu.memory_space<vmem>>, vector<1x32x128xf32>
      %94 = vector.shape_cast %93 : vector<1x32x128xf32> to vector<32x128xf32>
      %95 = vector.broadcast %92 : vector<32x1xf32> to vector<32x128xf32>
      %96 = arith.mulf %94, %95 : vector<32x128xf32>
      %c1_68 = arith.constant 1 : index
      %c0_69 = arith.constant 0 : index
      %c0_70 = arith.constant 0 : index
      %97 = vector.load %arg7[%c1_68, %c0_69, %c0_70] : memref<2x128x32xf32, #tpu.memory_space<vmem>>, vector<1x128x32xf32>
      %98 = vector.shape_cast %97 : vector<1x128x32xf32> to vector<128x32xf32>
      %cst_71 = arith.constant dense<0.000000e+00> : vector<32x32xf32>
      %99 = tpu.matmul %96, %98, %cst_71 {dimension_numbers = #tpu.dot_dimension_numbers<[1], [0], [0], [1], [0, 0, 1, 1], [], []>} : vector<32x128xf32>, vector<128x32xf32>, vector<32x32xf32> -> vector<32x32xf32>
      %100 = arith.addf %89, %99 : vector<32x32xf32>
      %c0_72 = arith.constant 0 : index
      %c0_73 = arith.constant 0 : index
      %c0_74 = arith.constant 0 : index
      %101 = vector.load %arg3[%c0_72, %c0_73, %c0_74] : memref<1x32x32xf32, #tpu.memory_space<vmem>>, vector<1x32x32xf32>
      %102 = vector.shape_cast %101 : vector<1x32x32xf32> to vector<32x32xf32>
      %103 = arith.addf %102, %100 : vector<32x32xf32>
      %c0_75 = arith.constant 0 : index
      %c0_76 = arith.constant 0 : index
      %c0_77 = arith.constant 0 : index
      %104 = vector.load %arg8[%c0_75, %c0_76, %c0_77] : memref<1x32x32xf32, #tpu.memory_space<vmem>>, vector<1x32x32xf32>
      %105 = vector.shape_cast %104 : vector<1x32x32xf32> to vector<32x32xf32>
      %106 = vector.shape_cast %103 : vector<32x32xf32> to vector<1x32x32xf32>
      tpu.vector_store %arg8[%c0_75, %c0_76, %c0_77], %106 {strides = array<i32>} : memref<1x32x32xf32, #tpu.memory_space<vmem>>, vector<1x32x32xf32>,
    } else {
    }
    return
  }
  func.func @transform_0(%arg0: i32, %arg1: i32, %arg2: i32) -> (i32, i32, i32) {
    %c0_i32 = arith.constant 0 : i32
    %c0_i32_0 = arith.constant 0 : i32
    return %arg0, %arg1, %c0_i32 : i32, i32, i32
  }
  func.func @transform_1(%arg0: i32, %arg1: i32, %arg2: i32) -> (i32, i32, i32) {
    %c0_i32 = arith.constant 0 : i32
    %c0_i32_0 = arith.constant 0 : i32
    return %arg0, %arg2, %c0_i32 : i32, i32, i32
  }
  func.func @transform_2(%arg0: i32, %arg1: i32, %arg2: i32) -> (i32, i32) {
    %c0_i32 = arith.constant 0 : i32
    %c0_i32_0 = arith.constant 0 : i32
    %c0_i32_1 = arith.constant 0 : i32
    return %c0_i32, %c0_i32_0 : i32, i32
  }
  func.func @transform_3(%arg0: i32, %arg1: i32, %arg2: i32) -> (i32, i32) {
    %c0_i32 = arith.constant 0 : i32
    %c0_i32_0 = arith.constant 0 : i32
    %c0_i32_1 = arith.constant 0 : i32
    return %c0_i32, %c0_i32_0 : i32, i32
  }
  func.func @transform_4(%arg0: i32, %arg1: i32, %arg2: i32) -> (i32, i32, i32) {
    %c0_i32 = arith.constant 0 : i32
    %c0_i32_0 = arith.constant 0 : i32
    %c0_i32_1 = arith.constant 0 : i32
    %c0_i32_2 = arith.constant 0 : i32
    return %c0_i32, %c0_i32_0, %c0_i32_1 : i32, i32, i32
  }
  func.func @transform_5(%arg0: i32, %arg1: i32, %arg2: i32) -> (i32, i32, i32) {
    %c0_i32 = arith.constant 0 : i32
    %c0_i32_0 = arith.constant 0 : i32
    return %arg0, %arg1, %c0_i32 : i32, i32, i32
  }
}

</mosaic_0001>

<bundles_post_ra>
// kernel: tpu_custom_call.1
= control target key start
LH: loop header
LB: loop body
LE: loop exit
PB: predicated region body
PF: predicated region fallthrough
CT: control target
= control target key end

     0   :  { %s1556_s18 = smov 0   ;;  %s1558_s19 = smov 0   ;;  %s1989_s0 = inlined_call_operand.vmem [shape: f32[2,64,32], index: 0, kind: input, shape index: {}]   ;;  %s1990_s1 = inlined_call_operand.vmem [shape: f32[2,64,32], index: 1, kind: input, shape index: {}]   ;;  %s1991_s2 = inlined_call_operand.vmem [shape: f32[32,256], index: 2, kind: input, shape index: {}]   ;;  %s1992_s3 = inlined_call_operand.vmem [shape: f32[32,512], index: 3, kind: input, shape index: {}]   ;;  %s1993_s4 = inlined_call_operand.vmem [shape: f32[2,128,32], index: 4, kind: input, shape index: {}]   ;;  %s1994_s5 = inlined_call_operand.vmem [shape: f32[2,64,32], index: 5, kind: output, shape index: {}]  }
   0x1   :  { %s1560_s20 = smov 0   ;;  %s1562_s21 = smov 0  }
   0x2   :  { %s1564_s22 = smov 0   ;;  %s1566_s23 = smov 0  }
   0x3   :  { %s1568_s24 = smov 0  }
   0x4 LB: > { %s27_s25 = sadd.s32 1, %s1508_s21  ;;  %s30_s26 = sadd.s32 1, %s1512_s22  ;;  %s1520_s24 = sphi %s1568_s24, %s15_s24   ;;  %s1516_s23 = sphi %s1566_s23, %s2000_s23   ;;  %s1512_s22 = sphi %s1564_s22, %s1999_s22   ;;  %s1508_s21 = sphi %s1562_s21, %s1998_s21   ;;  %s1504_s20 = sphi %s1560_s20, %s1997_s20   ;;  %s1500_s19 = sphi %s1558_s19, %s1996_s19   ;;  %s1496_s18 = sphi %s1556_s18, %s1995_s18  }
   0x5   : > { %p28_p0 = scmp.ge.s32.totalorder %s27_s25, 4  ;;  %p1258_p1 = scmp.ge.s32.totalorder %s1520_s24, 1 }
   0x6   : > { %p232_p2 = scmp.lt.s32.totalorder %s1520_s24, 17  ;;  %s34_s27 = sadd.s32 1, %s1516_s23 }
   0x7   : > { %s2002_s25 = smov (%p28_p0, %s27_s25), 0  ;;  %s2004_s26 = smov (!%p28_p0, %s30_s26), %s1512_s22 }
   0x8   : > { %p233_p3 = pnand %p1258_p1, %p232_p2  ;;  %p32_p4 = scmp.ge.s32.totalorder %s2004_s26, 2 }
   0x9   : > { %s1259_s28 = sshll.u32 (!%p233_p3), %s1500_s19, 2  ;;  %p278_p6 = scmp.lt.s32.totalorder (!%p233_p3), %s1504_s20, 1 }
   0xa   : > { %s2006_s26 = smov (%p32_p4, %s2004_s26), 0  ;;  %s2008_s27 = smov (!%p32_p4, %s34_s27), %s1516_s23 }
   0xb   : > { %p36_p5 = scmp.ge.s32.totalorder %s2008_s27, 2  ;;  %236 = sbr.rel (%p233_p3) target bundleno = 1152 (0x480), region = 40 }
   0xc   : > { %p280_p7 = scmp.lt.s32.totalorder (!%p233_p3), %s1259_s28, 7  ;;  %s1262_s29 = sshll.u32 (!%p233_p3), %s1496_s18, 1 }
   0xd   : > { %s2010_s27 = smov (%p36_p5, %s2008_s27), 0  ;;  %p290_p8 = scmp.lt.s32.totalorder (!%p233_p3), %s1262_s29, 7 }
   0xe   : > { %p1268_p9 = scmp.ne.s32.totalorder (!%p233_p3), %s1496_s18, 0 }
  0x10   : > { %s2012_s20 = smov (!%p278_p6, %s1504_s20), 1  ;;  %s2014_s28 = smov (!%p280_p7, %s1259_s28), 7 }
  0x11   : > { %s1260_s30 = sshll.u32 %s2012_s20, 3  ;;  %s2016_s29 = smov (!%p290_p8, %s1262_s29), 7 }
  0x12   : > { %s283_s6 = sadd.s32 %s1260_s30, %s2014_s28  ;;  %s293_s14 = sadd.s32 %s1260_s30, %s2016_s29 }
  0x13   : > { %s1261_s7 = sshll.u32 %s283_s6, 3  ;;  %s1264_s15 = sshll.u32 %s293_s14, 3 }
  0x14   : > { %s1604_s10 = scalar_lea.vmem %s1989_s0, %s1261_s7  ;;  %s1609_s13 = scalar_lea.vmem %s1994_s5, %s1261_s7 }
  0x15   : > { %s1614_s19 = scalar_lea.vmem %s1990_s1, %s1264_s15  ;;  %310 = sbr.rel (%p1268_p9) target bundleno = 176 (0xb0), region = 44 }
  0x1a   : > { %v321_v0 = vld [vmem:[%s1991_s2 + $0x30] sm:$0xff]  ;;  %v322_v1 = vld [vmem:[%s1991_s2 + $0x38] sm:$0xff]  ;;  %v319_v2 = vld [vmem:[%s1991_s2 + $0x20] sm:$0xff]  ;;  %vm323_vm0 = vcmask 261120   ;;  %vm402_vm1 = vcmask 7168   ;;  %v1522_v12 = vmov -inf  }
  0x1b   : > { %1312 = vmatpush.msra.mxu2 %v321_v0  ;;  %1316 = vmatpush.msra.mxu3 %v322_v1  ;;  %v320_v3 = vld [vmem:[%s1991_s2 + $0x28] sm:$0xff]  ;;  %v317_v4 = vld [vmem:[%s1991_s2 + $0x10] sm:$0xff]  ;;  %v318_v5 = vld [vmem:[%s1991_s2 + $0x18] sm:$0xff]  ;;  %403 = vst.msk [vmem:[#allocation3] sm:$0xff] %vm402_vm1, %v1522_v12  ;;  %v1523_v13 = vmov 0.0  }
  0x1c   : > { %348 = vmatpush.msra.mxu0 %v321_v0  ;;  %377 = vmatpush.msra.mxu1 %v322_v1  ;;  %v315_v6 = vld [vmem:[%s1991_s2] sm:$0xff]  ;;  %v316_v7 = vld [vmem:[%s1991_s2 + $0x8] sm:$0xff]  ;;  %v313_v8 = vld [vmem:[%s1604_s10 + $0x10] sm:$0xff]  ;;  %404 = vst.msk [vmem:[#allocation3 + $0x8] sm:$0xff] %vm402_vm1, %v1522_v12 }
  0x1d   : > { %1313 = vmatpush.msra.mxu2 %v319_v2  ;;  %1317 = vmatpush.msra.mxu3 %v320_v3  ;;  %v311_v9 = vld [vmem:[%s1604_s10] sm:$0xff]  ;;  %v314_v10 = vld [vmem:[%s1604_s10 + $0x18] sm:$0xff]  ;;  %v312_v11 = vld [vmem:[%s1604_s10 + $0x8] sm:$0xff]  ;;  %405 = vst.msk [vmem:[#allocation3 + $0x10] sm:$0xff] %vm402_vm1, %v1522_v12 }
  0x1e   : > { %349 = vmatpush.msra.mxu0 %v319_v2  ;;  %378 = vmatpush.msra.mxu1 %v320_v3  ;;  %406 = vst.msk [vmem:[#allocation3 + $0x18] sm:$0xff] %vm402_vm1, %v1522_v12 }
  0x1f   : > { %1314 = vmatpush.msra.mxu2 %v317_v4  ;;  %1318 = vmatpush.msra.mxu3 %v318_v5  ;;  %407 = vst.msk [vmem:[#allocation3 + $0x20] sm:$0xff] %vm402_vm1, %v1522_v12 }
  0x20   : > { %350 = vmatpush.msra.mxu0 %v317_v4  ;;  %379 = vmatpush.msra.mxu1 %v318_v5  ;;  %408 = vst.msk [vmem:[#allocation3 + $0x28] sm:$0xff] %vm402_vm1, %v1522_v12 }
  0x21   : > { %1315 = vmatpush.msra.mxu2 %v315_v6  ;;  %1319 = vmatpush.msra.mxu3 %v316_v7  ;;  %409 = vst.msk [vmem:[#allocation3 + $0x30] sm:$0xff] %vm402_vm1, %v1522_v12 }
  0x22   : > { %1271 = vmatmul.msk.f32.vlgmr.msra.gmra.mxu2 %vm323_vm0, %v313_v8  ;;  %1275 = vmatmul.msk.f32.vlgmr.msra.gmra.mxu3 %vm323_vm0, %v313_v8  ;;  %410 = vst.msk [vmem:[#allocation3 + $0x38] sm:$0xff] %vm402_vm1, %v1522_v12 }
  0x23   : > { %351 = vmatpush.msra.mxu0 %v315_v6  ;;  %380 = vmatpush.msra.mxu1 %v316_v7  ;;  %411 = vst.msk [vmem:[#allocation4] sm:$0xff] %vm402_vm1, %v1523_v13 }
  0x24   : > { %1269 = vmatmul.msk.f32.vlgmr.msra.gmra.mxu0 %vm323_vm0, %v311_v9  ;;  %1273 = vmatmul.msk.f32.vlgmr.msra.gmra.mxu1 %vm323_vm0, %v311_v9  ;;  %412 = vst.msk [vmem:[#allocation4 + $0x8] sm:$0xff] %vm402_vm1, %v1523_v13 }
  0x25   : > { %413 = vst.msk [vmem:[#allocation4 + $0x10] sm:$0xff] %vm402_vm1, %v1523_v13 }
  0x26   : > { %414 = vst.msk [vmem:[#allocation4 + $0x18] sm:$0xff] %vm402_vm1, %v1523_v13 }
  0x27   : > { %415 = vst.msk [vmem:[#allocation4 + $0x20] sm:$0xff] %vm402_vm1, %v1523_v13 }
  0x28   : > { %416 = vst.msk [vmem:[#allocation4 + $0x28] sm:$0xff] %vm402_vm1, %v1523_v13 }
  0x29   : > { %417 = vst.msk [vmem:[#allocation4 + $0x30] sm:$0xff] %vm402_vm1, %v1523_v13 }
  0x2a   : > { %1272 = vmatmul.msk.f32.gmra.mxu2 %vm323_vm0, %v314_v10  ;;  %1276 = vmatmul.msk.f32.gmra.mxu3 %vm323_vm0, %v314_v10  ;;  %418 = vst.msk [vmem:[#allocation4 + $0x38] sm:$0xff] %vm402_vm1, %v1523_v13 }
  0x2b   : > { %419 = vst [vmem:[#allocation5] sm:$0xff] %v1523_v13 }
  0x2c   : > { %1270 = vmatmul.msk.f32.gmra.mxu0 %vm323_vm0, %v312_v11  ;;  %1274 = vmatmul.msk.f32.gmra.mxu1 %vm323_vm0, %v312_v11  ;;  %420 = vst [vmem:[#allocation5 + $0x18] sm:$0xff] %v1523_v13 }
  0x2d   : > { %421 = vst [vmem:[#allocation5 + $0x10] sm:$0xff] %v1523_v13 }
  0x2e   : > { %422 = vst [vmem:[#allocation5 + $0x20] sm:$0xff] %v1523_v13 }
  0x2f   : > { %423 = vst [vmem:[#allocation5 + $0x28] sm:$0xff] %v1523_v13 }
  0x30   : > { %424 = vst [vmem:[#allocation5 + $0x8] sm:$0xff] %v1523_v13 }
  0x31   : > { %425 = vst [vmem:[#allocation5 + $0x30] sm:$0xff] %v1523_v13 }
  0x32   : > { %426 = vst [vmem:[#allocation5 + $0x38] sm:$0xff] %v1523_v13 }
  0xa1   : > { %v353_v14 = vpop.f32.mrf.mxu0  ;;  %v382_v15 = vpop.f32.mrf.mxu1 }
  0xa2   : > { %394 = vst [vmem:[#allocation2 + $0x30] sm:$0xff] %v353_v14 }
  0xa3   : > { %395 = vst [vmem:[#allocation2] sm:$0xff] %v382_v15 }
  0xa5   : > { %v359_v16 = vpop.f32.mrf.mxu2  ;;  %v388_v17 = vpop.f32.mrf.mxu3 }
  0xa6   : > { %398 = vst [vmem:[#allocation2 + $0x8] sm:$0xff] %v359_v16 }
  0xa7   : > { %399 = vst [vmem:[#allocation2 + $0x20] sm:$0xff] %v388_v17 }
  0xa9   : > { %v356_v18 = vpop.f32.mrf.mxu0  ;;  %v385_v19 = vpop.f32.mrf.mxu1 }
  0xaa   : > { %396 = vst [vmem:[#allocation2 + $0x18] sm:$0xff] %v356_v18 }
  0xab   : > { %397 = vst [vmem:[#allocation2 + $0x10] sm:$0xff] %v385_v19 }
  0xad   : > { %v362_v20 = vpop.f32.mrf.mxu2  ;;  %v391_v21 = vpop.f32.mrf.mxu3 }
  0xae   : > { %400 = vst [vmem:[#allocation2 + $0x28] sm:$0xff] %v362_v20 }
  0xaf   : > { %401 = vst [vmem:[#allocation2 + $0x38] sm:$0xff] %v391_v21 }
  0xb0 PF: > { %v441_v22 = vld [vmem:[%s1992_s3 + $0x60] sm:$0xff]  ;;  %v442_v23 = vld [vmem:[%s1992_s3 + $0x68] sm:$0xff]  ;;  %v443_v28 = vld [vmem:[%s1992_s3 + $0x70] sm:$0xff]  ;;  %vm445_vm2 = vcmask 261120   ;;  %vm581_vm3 = vcmask 130048   ;;  %v1524_v6 = vmov 0  }
  0xb1   : > { %v437_v24 = vld [vmem:[%s1992_s3 + $0x40] sm:$0xff]  ;;  %464 = vmatpush.msra.mxu0 %v441_v22  ;;  %487 = vmatpush.msra.mxu1 %v442_v23  ;;  %v438_v25 = vld [vmem:[%s1992_s3 + $0x48] sm:$0xff]  ;;  %v439_v29 = vld [vmem:[%s1992_s3 + $0x50] sm:$0xff]  ;;  %vm666_vm4 = vcmask 7168   ;;  %p1293_p10 = scmp.ne.s32.totalorder %s1496_s18, 3 }
  0xb2   : > { %v433_v26 = vld [vmem:[%s1992_s3 + $0x20] sm:$0xff]  ;;  %v434_v27 = vld [vmem:[%s1992_s3 + $0x28] sm:$0xff]  ;;  %510 = vmatpush.msra.mxu2 %v443_v28  ;;  %v435_v33 = vld [vmem:[%s1992_s3 + $0x30] sm:$0xff]  ;;  %1412 = vset.pattern.permute.xlu0 %v1524_v6 }
  0xb3   : > { %465 = vmatpush.msra.mxu0 %v437_v24  ;;  %488 = vmatpush.msra.mxu1 %v438_v25  ;;  %v429_v30 = vld [vmem:[%s1992_s3] sm:$0xff]  ;;  %v430_v31 = vld [vmem:[%s1992_s3 + $0x8] sm:$0xff]  ;;  %v431_v35 = vld [vmem:[%s1992_s3 + $0x10] sm:$0xff] }
  0xb4   : > { %v427_v32 = vld [vmem:[%s1614_s19] sm:$0xff]  ;;  %511 = vmatpush.msra.mxu2 %v439_v29  ;;  %v428_v34 = vld [vmem:[%s1614_s19 + $0x8] sm:$0xff]  ;;  %v544_v40 = vld [vmem:[#allocation2 + $0x30] sm:$0xff]  ;;  %1413 = vset.pattern.permute.xlu2 %v1524_v6 }
  0xb5   : > { %466 = vmatpush.msra.mxu0 %v433_v26  ;;  %489 = vmatpush.msra.mxu1 %v434_v27  ;;  %v752_v41 = vld [vmem:[#allocation2] sm:$0xff]  ;;  %v545_v42 = vld [vmem:[#allocation2 + $0x18] sm:$0xff]  ;;  %v753_v43 = vld [vmem:[#allocation2 + $0x10] sm:$0xff] }
  0xb6   : > { %512 = vmatpush.msra.mxu2 %v435_v33  ;;  %v546_v44 = vld [vmem:[#allocation2 + $0x8] sm:$0xff]  ;;  %v754_v45 = vld [vmem:[#allocation2 + $0x20] sm:$0xff]  ;;  %v755_v47 = vld [vmem:[#allocation2 + $0x38] sm:$0xff]  ;;  %1414 = vset.pattern.permute.xlu1 %v1524_v6 }
  0xb7   : > { %467 = vmatpush.msra.mxu0 %v429_v30  ;;  %490 = vmatpush.msra.mxu1 %v430_v31  ;;  %v547_v46 = vld [vmem:[#allocation2 + $0x28] sm:$0xff]  ;;  %v444_v51 = vld [vmem:[%s1992_s3 + $0x78] sm:$0xff]  ;;  %v577_v7 = vld [vmem:[#allocation3] sm:$0xff] }
  0xb8   : > { %1277 = vmatmul.msk.f32.vlgmr.msra.gmra.mxu0 %vm445_vm2, %v427_v32  ;;  %1279 = vmatmul.msk.f32.vlgmr.msra.gmra.mxu1 %vm445_vm2, %v427_v32  ;;  %v440_v52 = vld [vmem:[%s1992_s3 + $0x58] sm:$0xff]  ;;  %v786_v12 = vld [vmem:[#allocation3 + $0x20] sm:$0xff]  ;;  %v578_v13 = vld [vmem:[#allocation3 + $0x8] sm:$0xff] }
  0xb9   : > { %513 = vmatpush.msra.mxu2 %v431_v35  ;;  %533 = vmatpush.msra.mxu3 %v444_v51  ;;  %v436_v54 = vld [vmem:[%s1992_s3 + $0x38] sm:$0xff]  ;;  %v1764_v21 = vld [vmem:[#allocation3 + $0x28] sm:$0xff]  ;;  %v579_v22 = vld [vmem:[#allocation3 + $0x10] sm:$0xff] }
  0xba   : > { %1281 = vmatmul.msk.f32.vlgmr.msra.gmra.mxu2 %vm445_vm2, %v427_v32  ;;  %v432_v55 = vld [vmem:[%s1992_s3 + $0x18] sm:$0xff]  ;;  %v1778_v29 = vld [vmem:[#allocation3 + $0x30] sm:$0xff] }
  0xbb   : > { %534 = vmatpush.msra.mxu3 %v440_v52  ;;  %v580_v30 = vld [vmem:[#allocation3 + $0x18] sm:$0xff] }
  0xbd   : > { %535 = vmatpush.msra.mxu3 %v436_v54 }
  0xbf   : > { %536 = vmatpush.msra.mxu3 %v432_v55 }
  0xc0   : > { %1278 = vmatmul.msk.f32.gmra.mxu0 %vm445_vm2, %v428_v34  ;;  %1280 = vmatmul.msk.f32.gmra.mxu1 %vm445_vm2, %v428_v34 }
  0xc1   : > { %1283 = vmatmul.msk.f32.vlgmr.msra.gmra.mxu3 %vm445_vm2, %v427_v32 }
  0xc2   : > { %1282 = vmatmul.msk.f32.gmra.mxu2 %vm445_vm2, %v428_v34 }
  0xc9   : > { %1284 = vmatmul.msk.f32.gmra.mxu3 %vm445_vm2, %v428_v34 }
 0x135   : > { %v469_v36 = vpop.f32.mrf.mxu0  ;;  %v492_v37 = vpop.f32.mrf.mxu1 }
 0x13d   : > { %v472_v38 = vpop.f32.mrf.mxu0  ;;  %v495_v39 = vpop.f32.mrf.mxu1 }
 0x13e   : > { %562 = vmatpush.xpose.msrb.mxu0 %v472_v38  ;;  %770 = vmatpush.xpose.msrb.mxu2 %v495_v39  ;;  %v515_v48 = vpop.f32.mrf.mxu2  ;;  %v1790_v39 = vld [vmem:[#allocation3 + $0x38] sm:$0xff] }
 0x142   : > { %563 = vmatpush.xpose.msrb.mxu0 %v469_v36  ;;  %771 = vmatpush.xpose.msrb.mxu2 %v492_v37 }
 0x145   : > { %564 = vmatmul.f32.vlgmr.msrb.gmra.mxu0 %v544_v40  ;;  %772 = vmatmul.f32.vlgmr.msrb.gmra.mxu2 %v752_v41 }
 0x146   : > { %v518_v49 = vpop.f32.mrf.mxu2 }
 0x147   : > { %725 = vmatpush.msrb.mxu1 %v518_v49  ;;  %v538_v49 = vpop.f32.mrf.mxu3 }
 0x149   : > { %726 = vmatpush.msrb.mxu1 %v515_v48 }
 0x14d   : > { %567 = vmatmul.f32.gmra.mxu0 %v545_v42  ;;  %775 = vmatmul.f32.gmra.mxu2 %v753_v43 }
 0x14f   : > { %v541_v51 = vpop.f32.mrf.mxu3 }
 0x150   : > { %934 = vmatpush.msrb.mxu3 %v541_v51 }
 0x152   : > { %935 = vmatpush.msrb.mxu3 %v538_v49 }
 0x155   : > { %570 = vmatmul.f32.gmra.mxu0 %v546_v44  ;;  %778 = vmatmul.f32.gmra.mxu2 %v754_v45 }
 0x15d   : > { %573 = vmatmul.f32.gmra.mxu0 %v547_v46  ;;  %781 = vmatmul.f32.gmra.mxu2 %v755_v47 }
 0x1c2   : > { %v1713_v50 = vpop.f32.mrf.mxu0 }
 0x1c3   : > { %v582_v53 = vsel %vm581_vm3, %v1713_v50, -inf }
 0x1c4   : > { %583 = vmax.xlane.f32.xlu0 %v582_v53 }
 0x1c8   : > { %v1729_v56 = vpop.f32.mrf.mxu2 }
 0x1c9   : > { %v790_v57 = vsel %vm581_vm3, %v1729_v56, -inf }
 0x1ca   : > { %v1733_v58 = vpop.f32.mrf.mxu0 }
 0x1cb   : > { %v585_v59 = vsel %vm581_vm3, %v1733_v58, -inf }
 0x1cc   : > { %791 = vmax.xlane.f32.xlu0 %v790_v57  ;;  %586 = vmax.xlane.f32.xlu1 %v585_v59 }
 0x1d0   : > { %v1738_v60 = vpop.f32.mrf.mxu2 }
 0x1d1   : > { %v793_v61 = vsel %vm581_vm3, %v1738_v60, -inf }
 0x1d2   : > { %v1742_v62 = vpop.f32.mrf.mxu0 }
 0x1d3   : > { %v588_v63 = vsel %vm581_vm3, %v1742_v62, -inf }
 0x1d4   : > { %794 = vmax.xlane.f32.xlu1 %v793_v61  ;;  %589 = vmax.xlane.f32.xlu2 %v588_v63 }
 0x1d8   : > { %v1747_v0 = vpop.f32.mrf.mxu2 }
 0x1d9   : > { %v796_v1 = vsel %vm581_vm3, %v1747_v0, -inf }
 0x1da   : > { %v1751_v2 = vpop.f32.mrf.mxu0 }
 0x1db   : > { %v591_v3 = vsel %vm581_vm3, %v1751_v2, -inf }
 0x1dc   : > { %797 = vmax.xlane.f32.xlu2 %v796_v1  ;;  %592 = vmax.xlane.f32.xlu1 %v591_v3 }
 0x1e0   : > { %v1755_v4 = vpop.f32.mrf.mxu2 }
 0x1e1   : > { %v799_v5 = vsel %vm581_vm3, %v1755_v4, -inf }
 0x1e2   : > { %800 = vmax.xlane.f32.xlu0 %v799_v5 }
 0x237   : > { %v584_v8 = vpop.xlane.xlu0 %583 }
 0x238   : > { %v594_v9 = vmax.f32 %v577_v7, %v584_v8 }
 0x23a   : > { %v598_v10 = vsub.f32 %v577_v7, %v594_v9  ;;  %748 = vst.msk [vmem:[#allocation3] sm:$0xff] %vm666_vm4, %v594_v9  ;;  %612 = vperm.xlu0 %1412, %v594_v9  }
 0x23c   : > { %v602_v11 = vmul.f32 1.442695, %v598_v10 }
 0x23e   : > { %1415 = vpow2.f32 %v602_v11 }
 0x23f   : > { %v792_v14 = vpop.xlane.xlu0 %791  ;;  %v587_v15 = vpop.xlane.xlu1 %586 }
 0x240   : > { %v802_v16 = vmax.f32 %v786_v12, %v792_v14  ;;  %v595_v17 = vmax.f32 %v578_v13, %v587_v15 }
 0x242   : > { %v806_v18 = vsub.f32 %v786_v12, %v802_v16  ;;  %957 = vst.msk [vmem:[#allocation3 + $0x20] sm:$0xff] %vm666_vm4, %v802_v16  ;;  %820 = vperm.xlu2 %1413, %v802_v16   ;;  %v599_v35 = vsub.f32 %v578_v13, %v595_v17 }
 0x243   : > { %749 = vst.msk [vmem:[#allocation3 + $0x8] sm:$0xff] %vm666_vm4, %v595_v17 }
 0x244   : > { %v1762_v19 = vpop.eup %1415  ;;  %v810_v20 = vmul.f32 1.442695, %v806_v18  ;;  %v604_v42 = vmul.f32 1.442695, %v599_v35 }
 0x245   : > { %677 = vperm.xlu0 %1412, %v1762_v19  }
 0x246   : > { %1417 = vpow2.f32 %v810_v20 }
 0x247   : > { %v795_v23 = vpop.xlane.xlu1 %794  ;;  %v590_v24 = vpop.xlane.xlu2 %589 }
 0x248   : > { %v1768_v25 = vmax.f32 %v1764_v21, %v795_v23  ;;  %v596_v26 = vmax.f32 %v579_v22, %v590_v24 }
 0x24a   : > { %v807_v27 = vsub.f32 %v1764_v21, %v1768_v25  ;;  %958 = vst.msk [vmem:[#allocation3 + $0x28] sm:$0xff] %vm666_vm4, %v1768_v25  ;;  %617 = vperm.xlu2 %1413, %v595_v17   ;;  %825 = vperm.xlu1 %1414, %v1768_v25   ;;  %v600_v38 = vsub.f32 %v579_v22, %v596_v26  ;;  %v643_v25 = vld [vmem:[#allocation4 + $0x8] sm:$0xff] }
 0x24b   : > { %750 = vst.msk [vmem:[#allocation3 + $0x10] sm:$0xff] %vm666_vm4, %v596_v26 }
 0x24c   : > { %v1776_v28 = vpop.eup %1417  ;;  %v606_v44 = vmul.f32 1.442695, %v600_v38 }
 0x24d   : > { %886 = vperm.xlu0 %1412, %v1776_v28  }
 0x24f   : > { %v798_v31 = vpop.xlane.xlu2 %797  ;;  %v593_v32 = vpop.xlane.xlu1 %592 }
 0x250   : > { %v1782_v33 = vmax.f32 %v1778_v29, %v798_v31  ;;  %v597_v34 = vmax.f32 %v580_v30, %v593_v32 }
 0x252   : > { %v808_v36 = vsub.f32 %v1778_v29, %v1782_v33  ;;  %959 = vst.msk [vmem:[#allocation3 + $0x30] sm:$0xff] %vm666_vm4, %v1782_v33  ;;  %v601_v37 = vsub.f32 %v580_v30, %v597_v34  ;;  %830 = vperm.xlu2 %1413, %v1782_v33   ;;  %622 = vperm.xlu1 %1414, %v596_v26  }
 0x253   : > { %751 = vst.msk [vmem:[#allocation3 + $0x18] sm:$0xff] %vm666_vm4, %v597_v34 }
 0x254   : > { %v608_v40 = vmul.f32 1.442695, %v601_v37  ;;  %v812_v37 = vmul.f32 1.442695, %v807_v27  ;;  %v814_v38 = vmul.f32 1.442695, %v808_v36 }
 0x255   : > { %v801_v41 = vpop.xlane.xlu0 %800 }
 0x256   : > { %v1793_v43 = vmax.f32 %v1790_v39, %v801_v41  ;;  %1419 = vpow2.f32 %v608_v40 }
 0x257   : > { %1421 = vpow2.f32 %v604_v42 }
 0x258   : > { %v809_v45 = vsub.f32 %v1790_v39, %v1793_v43  ;;  %960 = vst.msk [vmem:[#allocation3 + $0x38] sm:$0xff] %vm666_vm4, %v1793_v43  ;;  %1423 = vpow2.f32 %v606_v44 }
 0x25a   : > { %835 = vperm.xlu2 %1413, %v1793_v43   ;;  %627 = vperm.xlu1 %1414, %v597_v34   ;;  %v851_v43 = vld [vmem:[#allocation4 + $0x20] sm:$0xff] }
 0x25c   : > { %v1800_v46 = vpop.eup %1419 }
 0x25d   : > { %692 = vperm.xlu0 %1412, %v1800_v46   ;;  %v1803_v47 = vpop.eup %1421 }
 0x25e   : > { %v1805_v48 = vpop.eup %1423  ;;  %v647_v27 = vmul.f32 %v1803_v47, %v643_v25 }
 0x262   : > { %682 = vperm.xlu1 %1414, %v1803_v47   ;;  %687 = vperm.xlu2 %1413, %v1805_v48   ;;  %v671_v47 = vld [vmem:[#allocation5] sm:$0xff] }
 0x29c   : > { %v821_v52 = vpop.permute.xlu2 %820 }
 0x29d   : > { %v838_v53 = vsub.f32 %v1729_v56, %v821_v52  ;;  %v880_v52 = vld [vmem:[#allocation5 + $0x28] sm:$0xff] }
 0x29f   : > { %v842_v54 = vmul.f32 1.442695, %v838_v53  ;;  %v642_v53 = vld [vmem:[#allocation4] sm:$0xff] }
 0x2a1   : > { %1425 = vpow2.f32 %v842_v54  ;;  %v853_v54 = vld [vmem:[#allocation4 + $0x30] sm:$0xff] }
 0x2a4   : > { %v618_v55 = vpop.permute.xlu2 %617 }
 0x2a5   : > { %v631_v57 = vsub.f32 %v1733_v58, %v618_v55 }
 0x2a7   : > { %v1426_v59 = vpop.eup %1425  ;;  %v636_v61 = vmul.f32 1.442695, %v631_v57 }
 0x2a8   : > { %1289 = vmatmul.msk.f32.vlgmr.msrb.gmra.mxu3 %vm581_vm3, %v1426_v59  ;;  %v859_v63 = vsel %vm581_vm3, %v1426_v59, 0.0 }
 0x2a9   : > { %1427 = vpow2.f32 %v636_v61  ;;  %860 = vadd.xlane.f32.xlu1 %v859_v63 }
 0x2ac   : > { %v613_v1 = vpop.permute.xlu0 %612  ;;  %v831_v3 = vpop.permute.xlu2 %830 }
 0x2ad   : > { %v630_v5 = vsub.f32 %v1713_v50, %v613_v1  ;;  %v840_v6 = vsub.f32 %v1747_v0, %v831_v3 }
 0x2af   : > { %v1428_v56 = vpop.eup %1427  ;;  %v634_v7 = vmul.f32 1.442695, %v630_v5  ;;  %v846_v8 = vmul.f32 1.442695, %v840_v6 }
 0x2b0   : > { %v653_v9 = vsel %vm581_vm3, %v1428_v56, 0.0 }
 0x2b1   : > { %1429 = vpow2.f32 %v634_v7  ;;  %654 = vadd.xlane.f32.xlu2 %v653_v9  ;;  %v672_v9 = vld [vmem:[#allocation5 + $0x18] sm:$0xff] }
 0x2b2   : > { %1431 = vpow2.f32 %v846_v8  ;;  %v852_v8 = vld [vmem:[#allocation4 + $0x28] sm:$0xff] }
 0x2b4   : > { %v836_v14 = vpop.permute.xlu2 %835 }
 0x2b5   : > { %v841_v18 = vsub.f32 %v1755_v4, %v836_v14  ;;  %v816_v4 = vmul.f32 1.442695, %v809_v45  ;;  %v855_v45 = vmul.f32 %v1776_v28, %v851_v43  ;;  %v646_v28 = vmul.f32 %v1762_v19, %v642_v53 }
 0x2b7   : > { %v1430_v58 = vpop.eup %1429  ;;  %v848_v23 = vmul.f32 1.442695, %v841_v18  ;;  %v678_v41 = vpop.permute.xlu0 %677  ;;  %v673_v18 = vld [vmem:[#allocation5 + $0x10] sm:$0xff] }
 0x2b8   : > { %v1432_v10 = vpop.eup %1431  ;;  %1285 = vmatmul.msk.f32.vlgmr.msrb.gmra.mxu1 %vm581_vm3, %v1430_v58  ;;  %v650_v11 = vsel %vm581_vm3, %v1430_v58, 0.0  ;;  %v695_v6 = vmul.f32 %v678_v41, %v671_v47 }
 0x2b9   : > { %v865_v12 = vsel %vm581_vm3, %v1432_v10, 0.0  ;;  %651 = vadd.xlane.f32.xlu0 %v650_v11 }
 0x2ba   : > { %866 = vadd.xlane.f32.xlu2 %v865_v12 }
 0x2bc   : > { %v826_v50 = vpop.permute.xlu1 %825  ;;  %v688_v44 = vpop.permute.xlu2 %687 }
 0x2bd   : > { %v839_v0 = vsub.f32 %v1738_v60, %v826_v50 }
 0x2bf   : > { %v844_v13 = vmul.f32 1.442695, %v839_v0  ;;  %v887_v49 = vpop.permute.xlu0 %886  ;;  %v644_v0 = vld [vmem:[#allocation4 + $0x10] sm:$0xff] }
 0x2c0   : > { %1286 = vmatmul.msk.f32.gmra.mxu1 %vm581_vm3, %v1428_v56  ;;  %v904_v55 = vmul.f32 %v887_v49, %v880_v52 }
 0x2c1   : > { %1433 = vpow2.f32 %v844_v13  ;;  %v648_v13 = vmul.f32 %v1805_v48, %v644_v0  ;;  %v674_v48 = vld [vmem:[#allocation5 + $0x20] sm:$0xff] }
 0x2c4   : > { %v623_v15 = vpop.permute.xlu1 %622 }
 0x2c5   : > { %v632_v16 = vsub.f32 %v1742_v62, %v623_v15 }
 0x2c7   : > { %v1434_v17 = vpop.eup %1433  ;;  %v638_v20 = vmul.f32 1.442695, %v632_v16  ;;  %v645_v16 = vld [vmem:[#allocation4 + $0x18] sm:$0xff] }
 0x2c8   : > { %1290 = vmatmul.msk.f32.gmra.mxu3 %vm581_vm3, %v1434_v17  ;;  %v862_v22 = vsel %vm581_vm3, %v1434_v17, 0.0  ;;  %v854_v17 = vld [vmem:[#allocation4 + $0x38] sm:$0xff] }
 0x2c9   : > { %1435 = vpow2.f32 %v638_v20  ;;  %863 = vadd.xlane.f32.xlu0 %v862_v22  ;;  %v649_v22 = vmul.f32 %v1800_v46, %v645_v16 }
 0x2ca   : > { %1437 = vpow2.f32 %v848_v23 }
 0x2cc   : > { %v628_v60 = vpop.permute.xlu1 %627 }
 0x2cd   : > { %v633_v24 = vsub.f32 %v1751_v2, %v628_v60  ;;  %v697_v60 = vmul.f32 %v688_v44, %v673_v18 }
 0x2cf   : > { %v1436_v26 = vpop.eup %1435  ;;  %v640_v30 = vmul.f32 1.442695, %v633_v24  ;;  %v693_v29 = vpop.permute.xlu0 %692 }
 0x2d0   : > { %1287 = vmatmul.msk.f32.gmra.mxu1 %vm581_vm3, %v1436_v26  ;;  %1291 = vmatmul.msk.f32.gmra.mxu3 %vm581_vm3, %v1432_v10  ;;  %v656_v62 = vsel %vm581_vm3, %v1436_v26, 0.0  ;;  %v1438_v31 = vpop.eup %1437 }
 0x2d1   : > { %1439 = vpow2.f32 %v640_v30  ;;  %657 = vadd.xlane.f32.xlu1 %v656_v62  ;;  %v868_v2 = vsel %vm581_vm3, %v1438_v31, 0.0 }
 0x2d2   : > { %1441 = vpow2.f32 %v816_v4 }
 0x2d3   : > { %1443 = vpow2.f32 %v812_v37 }
 0x2d4   : > { %1445 = vpow2.f32 %v814_v38  ;;  %v683_v42 = vpop.permute.xlu1 %682 }
 0x2d5   : > { %v696_v19 = vmul.f32 %v683_v42, %v672_v9 }
 0x2d7   : > { %v1440_v32 = vpop.eup %1439 }
 0x2d8   : > { %1288 = vmatmul.msk.f32.gmra.mxu1 %vm581_vm3, %v1440_v32  ;;  %1292 = vmatmul.msk.f32.gmra.mxu3 %vm581_vm3, %v1438_v31  ;;  %v659_v34 = vsel %vm581_vm3, %v1440_v32, 0.0  ;;  %v1836_v35 = vpop.eup %1441  ;;  %v881_v32 = vld [vmem:[#allocation5 + $0x8] sm:$0xff] }
 0x2d9   : > { %869 = vadd.xlane.f32.xlu1 %v868_v2  ;;  %660 = vadd.xlane.f32.xlu2 %v659_v34  ;;  %v1444_v39 = vpop.eup %1443  ;;  %v858_v23 = vmul.f32 %v1836_v35, %v854_v17  ;;  %v698_v34 = vmul.f32 %v693_v29, %v674_v48 }
 0x2da   : > { %v1446_v40 = vpop.eup %1445  ;;  %v856_v58 = vmul.f32 %v1444_v39, %v852_v8 }
 0x2db   : > { %v857_v61 = vmul.f32 %v1446_v40, %v853_v54 }
 0x2dd   : > { %901 = vperm.xlu0 %1412, %v1836_v35  }
 0x2f1   : > { %891 = vperm.xlu2 %1413, %v1444_v39   ;;  %v883_v39 = vld [vmem:[#allocation5 + $0x38] sm:$0xff] }
 0x2f2   : > { %896 = vperm.xlu1 %1414, %v1446_v40  }
 0x31c   : > { %v861_v51 = vpop.xlane.xlu1 %860 }
 0x31d   : > { %v871_v21 = vadd.f32 %v861_v51, %v855_v45  ;;  %v882_v45 = vld [vmem:[#allocation5 + $0x30] sm:$0xff] }
 0x31f   : > { %875 = vst.msk [vmem:[#allocation4 + $0x20] sm:$0xff] %vm666_vm4, %v871_v21 }
 0x324   : > { %v655_v33 = vpop.xlane.xlu2 %654 }
 0x325   : > { %v663_v36 = vadd.f32 %v655_v33, %v647_v27 }
 0x327   : > { %668 = vst.msk [vmem:[#allocation4 + $0x8] sm:$0xff] %vm666_vm4, %v663_v36 }
 0x32b   : > { %v937_v57 = vpop.f32.mrf.mxu3 }
 0x32c   : > { %v949_v59 = vadd.f32 %v937_v57, %v904_v55  ;;  %v652_v63 = vpop.xlane.xlu0 %651 }
 0x32d   : > { %v867_v1 = vpop.xlane.xlu2 %866  ;;  %v662_v3 = vadd.f32 %v652_v63, %v646_v28 }
 0x32e   : > { %953 = vst [vmem:[#allocation5 + $0x28] sm:$0xff] %v949_v59  ;;  %v873_v5 = vadd.f32 %v867_v1, %v857_v61 }
 0x32f   : > { %667 = vst.msk [vmem:[#allocation4] sm:$0xff] %vm666_vm4, %v662_v3 }
 0x330   : > { %877 = vst.msk [vmem:[#allocation4 + $0x30] sm:$0xff] %vm666_vm4, %v873_v5 }
 0x335   : > { %v728_v56 = vpop.f32.mrf.mxu1 }
 0x336   : > { %v740_v7 = vadd.f32 %v728_v56, %v695_v6 }
 0x338   : > { %744 = vst [vmem:[#allocation5] sm:$0xff] %v740_v7 }
 0x33c   : > { %v864_v10 = vpop.xlane.xlu0 %863 }
 0x33d   : > { %v872_v11 = vadd.f32 %v864_v10, %v856_v58  ;;  %v731_v12 = vpop.f32.mrf.mxu1 }
 0x33e   : > { %v741_v50 = vadd.f32 %v731_v12, %v696_v19 }
 0x33f   : > { %876 = vst.msk [vmem:[#allocation4 + $0x28] sm:$0xff] %vm666_vm4, %v872_v11 }
 0x340   : > { %745 = vst [vmem:[#allocation5 + $0x18] sm:$0xff] %v741_v50 }
 0x344   : > { %v658_v14 = vpop.xlane.xlu1 %657 }
 0x345   : > { %v664_v15 = vadd.f32 %v658_v14, %v648_v13 }
 0x347   : > { %669 = vst.msk [vmem:[#allocation4 + $0x10] sm:$0xff] %vm666_vm4, %v664_v15 }
 0x34b   : > { %v940_v20 = vpop.f32.mrf.mxu3 }
 0x34c   : > { %v661_v24 = vpop.xlane.xlu2 %660  ;;  %v870_v26 = vpop.xlane.xlu1 %869 }
 0x34d   : > { %v665_v30 = vadd.f32 %v661_v24, %v649_v22  ;;  %v874_v62 = vadd.f32 %v870_v26, %v858_v23  ;;  %v734_v4 = vpop.f32.mrf.mxu1 }
 0x34e   : > { %v742_v31 = vadd.f32 %v734_v4, %v697_v60 }
 0x34f   : > { %670 = vst.msk [vmem:[#allocation4 + $0x18] sm:$0xff] %vm666_vm4, %v665_v30  ;;  %v902_v40 = vpop.permute.xlu0 %901 }
 0x350   : > { %878 = vst.msk [vmem:[#allocation4 + $0x38] sm:$0xff] %vm666_vm4, %v874_v62  ;;  %v907_v42 = vmul.f32 %v902_v40, %v883_v39 }
 0x351   : > { %746 = vst [vmem:[#allocation5 + $0x10] sm:$0xff] %v742_v31 }
 0x353   : > { %v943_v2 = vpop.f32.mrf.mxu3 }
 0x354   : > { %v892_v37 = vpop.permute.xlu2 %891 }
 0x355   : > { %v905_v46 = vmul.f32 %v892_v37, %v881_v32  ;;  %v737_v38 = vpop.f32.mrf.mxu1 }
 0x356   : > { %v743_v35 = vadd.f32 %v737_v38, %v698_v34 }
 0x357   : > { %v950_v41 = vadd.f32 %v940_v20, %v905_v46 }
 0x358   : > { %747 = vst [vmem:[#allocation5 + $0x20] sm:$0xff] %v743_v35 }
 0x359   : > { %954 = vst [vmem:[#allocation5 + $0x8] sm:$0xff] %v950_v41 }
 0x35b   : > { %v946_v43 = vpop.f32.mrf.mxu3 }
 0x35c   : > { %v952_v44 = vadd.f32 %v946_v43, %v907_v42 }
 0x35e   : > { %956 = vst [vmem:[#allocation5 + $0x38] sm:$0xff] %v952_v44 }
 0x364   : > { %v897_v49 = vpop.permute.xlu1 %896 }
 0x365   : > { %v906_v51 = vmul.f32 %v897_v49, %v882_v45  ;;  %964 = sbr.rel (%p1293_p10) target bundleno = 1152 (0x480), region = 48 }
 0x367   : > { %v951_v21 = vadd.f32 %v943_v2, %v906_v51 }
 0x369   : > { %955 = vst [vmem:[#allocation5 + $0x30] sm:$0xff] %v951_v21 }
 0x36a   : > { %v967_v25 = vld [vmem:[#allocation4 + $0x10] sm:$0xff]  ;;  %v965_v27 = vld [vmem:[#allocation4] sm:$0xff]  ;;  %v1525_v29 = vmov 0   ;;  %v1016_v33 = vld [vmem:[%s1993_s4 + $0x78] sm:$0xff] }
 0x36b   : > { %1448 = vset.pattern.permute.xlu1 %v1525_v29  ;;  %1447 = vset.pattern.permute.xlu0 %v1525_v29  ;;  %1450 = vrcp.f32 %v967_v25  ;;  %v1019_v36 = vld [vmem:[#allocation4 + $0x30] sm:$0xff]  ;;  %v968_v52 = vld [vmem:[#allocation4 + $0x18] sm:$0xff]  ;;  %v1014_v54 = vld [vmem:[%s1993_s4 + $0x68] sm:$0xff] }
 0x36c   : > { %1452 = vrcp.f32 %v965_v27  ;;  %1449 = vset.pattern.permute.xlu2 %v1525_v29  ;;  %1336 = vmatpush.msra.mxu3 %v1016_v33  ;;  %v1015_v53 = vld [vmem:[%s1993_s4 + $0x70] sm:$0xff]  ;;  %v1309_v55 = vld [vmem:[%s1993_s4 + $0xf8] sm:$0xff]  ;;  %v1017_v28 = vld [vmem:[#allocation4 + $0x20] sm:$0xff] }
 0x36d   : > { %1099 = vmatpush.msra.mxu1 %v1016_v33  ;;  %v1308_v57 = vld [vmem:[%s1993_s4 + $0xf0] sm:$0xff]  ;;  %1070 = vmatpush.msra.mxu0 %v1309_v55  ;;  %1454 = vrcp.f32 %v1019_v36  ;;  %v1013_v59 = vld [vmem:[%s1993_s4 + $0x60] sm:$0xff]  ;;  %v1307_v63 = vld [vmem:[%s1993_s4 + $0xe8] sm:$0xff] }
 0x36e   : > { %1337 = vmatpush.msra.mxu3 %v1015_v53  ;;  %1320 = vmatpush.msra.mxu2 %v1309_v55  ;;  %1456 = vrcp.f32 %v968_v52  ;;  %v1012_v3 = vld [vmem:[%s1993_s4 + $0x58] sm:$0xff]  ;;  %v1306_v5 = vld [vmem:[%s1993_s4 + $0xe0] sm:$0xff]  ;;  %v1011_v6 = vld [vmem:[%s1993_s4 + $0x50] sm:$0xff] }
 0x36f   : > { %1100 = vmatpush.msra.mxu1 %v1015_v53  ;;  %1071 = vmatpush.msra.mxu0 %v1308_v57  ;;  %1458 = vrcp.f32 %v1017_v28  ;;  %v1020_v47 = vld [vmem:[#allocation4 + $0x38] sm:$0xff]  ;;  %v966_v7 = vld [vmem:[#allocation4 + $0x8] sm:$0xff]  ;;  %v1009_v11 = vld [vmem:[%s1993_s4 + $0x40] sm:$0xff] }
 0x370   : > { %1338 = vmatpush.msra.mxu3 %v1014_v54  ;;  %1321 = vmatpush.msra.mxu2 %v1308_v57  ;;  %v1010_v8 = vld [vmem:[%s1993_s4 + $0x48] sm:$0xff]  ;;  %v1305_v9 = vld [vmem:[%s1993_s4 + $0xd8] sm:$0xff]  ;;  %1460 = vrcp.f32 %v1020_v47  ;;  %v1304_v12 = vld [vmem:[%s1993_s4 + $0xd0] sm:$0xff] }
 0x371   : > { %v1451_v61 = vpop.eup %1450  ;;  %1101 = vmatpush.msra.mxu1 %v1014_v54  ;;  %1072 = vmatpush.msra.mxu0 %v1307_v63  ;;  %v1018_v19 = vld [vmem:[#allocation4 + $0x28] sm:$0xff]  ;;  %1462 = vrcp.f32 %v966_v7  ;;  %v1008_v50 = vld [vmem:[%s1993_s4 + $0x38] sm:$0xff]  ;;  %v1007_v13 = vld [vmem:[%s1993_s4 + $0x30] sm:$0xff] }
 0x372   : > { %v1453_v1 = vpop.eup %1452  ;;  %989 = vperm.xlu0 %1447, %v1451_v61   ;;  %1339 = vmatpush.msra.mxu3 %v1013_v59  ;;  %1464 = vrcp.f32 %v1018_v19  ;;  %v1303_v0 = vld [vmem:[%s1993_s4 + $0xc8] sm:$0xff]  ;;  %v1302_v16 = vld [vmem:[%s1993_s4 + $0xc0] sm:$0xff]  ;;  %v1301_v22 = vld [vmem:[%s1993_s4 + $0xb8] sm:$0xff] }
 0x373   : > { %979 = vperm.xlu1 %1448, %v1453_v1   ;;  %1322 = vmatpush.msra.mxu2 %v1307_v63  ;;  %v1455_v56 = vpop.eup %1454  ;;  %v1006_v15 = vld [vmem:[%s1993_s4 + $0x28] sm:$0xff]  ;;  %v1005_v20 = vld [vmem:[%s1993_s4 + $0x20] sm:$0xff]  ;;  %v1004_v23 = vld [vmem:[%s1993_s4 + $0x18] sm:$0xff] }
 0x374   : > { %1340 = vmatpush.msra.mxu3 %v1012_v3  ;;  %1102 = vmatpush.msra.mxu1 %v1013_v59  ;;  %v1457_v58 = vpop.eup %1456  ;;  %v1300_v60 = vld [vmem:[%s1993_s4 + $0xb0] sm:$0xff]  ;;  %v1299_v26 = vld [vmem:[%s1993_s4 + $0xa8] sm:$0xff]  ;;  %v1298_v62 = vld [vmem:[%s1993_s4 + $0xa0] sm:$0xff] }
 0x375   : > { %1073 = vmatpush.msra.mxu0 %v1306_v5  ;;  %1323 = vmatpush.msra.mxu2 %v1306_v5  ;;  %v1459_v10 = vpop.eup %1458  ;;  %v1003_v24 = vld [vmem:[%s1993_s4 + $0x10] sm:$0xff]  ;;  %v1002_v30 = vld [vmem:[%s1993_s4 + $0x8] sm:$0xff]  ;;  %v1001_v4 = vld [vmem:[%s1993_s4] sm:$0xff] }
 0x376   : > { %1341 = vmatpush.msra.mxu3 %v1011_v6  ;;  %994 = vperm.xlu2 %1449, %v1457_v58   ;;  %v1461_v14 = vpop.eup %1460  ;;  %v1297_v31 = vld [vmem:[%s1993_s4 + $0x98] sm:$0xff]  ;;  %v1296_v48 = vld [vmem:[%s1993_s4 + $0x90] sm:$0xff]  ;;  %v1295_v32 = vld [vmem:[%s1993_s4 + $0x88] sm:$0xff] }
 0x377   : > { %1103 = vmatpush.msra.mxu1 %v1012_v3  ;;  %1074 = vmatpush.msra.mxu0 %v1305_v9  ;;  %v1463_v17 = vpop.eup %1462  ;;  %v1294_v2 = vld [vmem:[%s1993_s4 + $0x80] sm:$0xff]  ;;  %v975_v34 = vld [vmem:[#allocation5 + $0x10] sm:$0xff]  ;;  %v1025_v44 = vld [vmem:[#allocation5 + $0x28] sm:$0xff] }
 0x378   : > { %1342 = vmatpush.msra.mxu3 %v1010_v8  ;;  %1324 = vmatpush.msra.mxu2 %v1305_v9  ;;  %v1465_v18 = vpop.eup %1464  ;;  %v973_v37 = vld [vmem:[#allocation5] sm:$0xff]  ;;  %v1027_v42 = vld [vmem:[#allocation5 + $0x30] sm:$0xff]  ;;  %v1028_v25 = vld [vmem:[#allocation5 + $0x38] sm:$0xff] }
 0x379   : > { %1104 = vmatpush.msra.mxu1 %v1011_v6  ;;  %1075 = vmatpush.msra.mxu0 %v1304_v12  ;;  %v976_v40 = vld [vmem:[#allocation5 + $0x20] sm:$0xff]  ;;  %v974_v29 = vld [vmem:[#allocation5 + $0x18] sm:$0xff]  ;;  %v1026_v33 = vld [vmem:[#allocation5 + $0x8] sm:$0xff] }
 0x37a   : > { %1041 = vperm.xlu0 %1447, %v1455_v56   ;;  %1343 = vmatpush.msra.mxu3 %v1009_v11  ;;  %v1128_v59 = vld [vmem:[%s1604_s10] sm:$0xff]  ;;  %v1130_v5 = vld [vmem:[%s1604_s10 + $0x10] sm:$0xff] }
 0x37b   : > { %1031 = vperm.xlu1 %1448, %v1459_v10   ;;  %1325 = vmatpush.msra.mxu2 %v1304_v12 }
 0x37c   : > { %1344 = vmatpush.msra.mxu3 %v1008_v50  ;;  %1105 = vmatpush.msra.mxu1 %v1010_v8  ;;  %v1129_v8 = vld [vmem:[%s1604_s10 + $0x8] sm:$0xff] }
 0x37d   : > { %1076 = vmatpush.msra.mxu0 %v1303_v0  ;;  %1326 = vmatpush.msra.mxu2 %v1303_v0 }
 0x37e   : > { %1345 = vmatpush.msra.mxu3 %v1007_v13  ;;  %1046 = vperm.xlu2 %1449, %v1461_v14  }
 0x37f   : > { %1106 = vmatpush.msra.mxu1 %v1009_v11  ;;  %1077 = vmatpush.msra.mxu0 %v1302_v16  ;;  %v1131_v11 = vld [vmem:[%s1604_s10 + $0x18] sm:$0xff] }
 0x380   : > { %1346 = vmatpush.msra.mxu3 %v1006_v15  ;;  %1327 = vmatpush.msra.mxu2 %v1302_v16 }
 0x381   : > { %1107 = vmatpush.msra.mxu1 %v1008_v50  ;;  %1078 = vmatpush.msra.mxu0 %v1301_v22 }
 0x382   : > { %984 = vperm.xlu0 %1447, %v1463_v17   ;;  %1347 = vmatpush.msra.mxu3 %v1005_v20 }
 0x383   : > { %1036 = vperm.xlu1 %1448, %v1465_v18   ;;  %1328 = vmatpush.msra.mxu2 %v1301_v22 }
 0x384   : > { %1108 = vmatpush.msra.mxu1 %v1007_v13  ;;  %1348 = vmatpush.msra.mxu3 %v1004_v23 }
 0x385   : > { %1079 = vmatpush.msra.mxu0 %v1300_v60  ;;  %1329 = vmatpush.msra.mxu2 %v1300_v60 }
 0x386   : > { %1109 = vmatpush.msra.mxu1 %v1006_v15  ;;  %1349 = vmatpush.msra.mxu3 %v1003_v24 }
 0x387   : > { %1080 = vmatpush.msra.mxu0 %v1299_v26  ;;  %1330 = vmatpush.msra.mxu2 %v1299_v26 }
 0x388   : > { %1110 = vmatpush.msra.mxu1 %v1005_v20  ;;  %1350 = vmatpush.msra.mxu3 %v1002_v30 }
 0x389   : > { %1081 = vmatpush.msra.mxu0 %v1298_v62  ;;  %1331 = vmatpush.msra.mxu2 %v1298_v62 }
 0x38a   : > { %1111 = vmatpush.msra.mxu1 %v1004_v23  ;;  %1351 = vmatpush.msra.mxu3 %v1001_v4 }
 0x38b   : > { %1082 = vmatpush.msra.mxu0 %v1297_v31  ;;  %1332 = vmatpush.msra.mxu2 %v1297_v31 }
 0x38c   : > { %1112 = vmatpush.msra.mxu1 %v1003_v24 }
 0x38d   : > { %1083 = vmatpush.msra.mxu0 %v1296_v48  ;;  %1333 = vmatpush.msra.mxu2 %v1296_v48 }
 0x38e   : > { %1113 = vmatpush.msra.mxu1 %v1002_v30 }
 0x38f   : > { %1084 = vmatpush.msra.mxu0 %v1295_v32  ;;  %1334 = vmatpush.msra.mxu2 %v1295_v32 }
 0x390   : > { %1114 = vmatpush.msra.mxu1 %v1001_v4 }
 0x391   : > { %1085 = vmatpush.msra.mxu0 %v1294_v2  ;;  %1335 = vmatpush.msra.mxu2 %v1294_v2 }
 0x3d0   : > { %v995_v41 = vpop.permute.xlu2 %994 }
 0x3d1   : > { %v1000_v43 = vmul.f32 %v995_v41, %v976_v40 }
 0x3d8   : > { %v1047_v27 = vpop.permute.xlu2 %1046 }
 0x3d9   : > { %v1052_v52 = vmul.f32 %v1047_v27, %v1028_v25 }
 0x3e4   : > { %v990_v46 = vpop.permute.xlu0 %989 }
 0x3e5   : > { %v999_v38 = vmul.f32 %v990_v46, %v975_v34  ;;  %v980_v35 = vpop.permute.xlu1 %979 }
 0x3e6   : > { %v997_v39 = vmul.f32 %v980_v35, %v973_v37 }
 0x3e7   : > { %1121 = vmatmul.f32.vlgmr.msra.gmra.mxu3 %v999_v38 }
 0x3e8   : > { %1115 = vmatmul.f32.vlgmr.msra.gmra.mxu1 %v997_v39 }
 0x3ec   : > { %v1042_v45 = vpop.permute.xlu0 %1041 }
 0x3ed   : > { %v1051_v49 = vmul.f32 %v1042_v45, %v1027_v42  ;;  %v1032_v51 = vpop.permute.xlu1 %1031 }
 0x3ee   : > { %v1049_v21 = vmul.f32 %v1032_v51, %v1025_v44 }
 0x3ef   : > { %1092 = vmatmul.f32.vlgmr.msra.gmra.mxu2 %v1051_v49  ;;  %1124 = vmatmul.f32.gmra.mxu3 %v1000_v43 }
 0x3f0   : > { %1086 = vmatmul.f32.vlgmr.msra.gmra.mxu0 %v1049_v21 }
 0x3f4   : > { %v985_v36 = vpop.permute.xlu0 %984 }
 0x3f5   : > { %v998_v53 = vmul.f32 %v985_v36, %v974_v29  ;;  %v1037_v54 = vpop.permute.xlu1 %1036 }
 0x3f6   : > { %v1050_v55 = vmul.f32 %v1037_v54, %v1026_v33 }
 0x3f7   : > { %1095 = vmatmul.f32.gmra.mxu2 %v1052_v52  ;;  %1118 = vmatmul.f32.gmra.mxu1 %v998_v53 }
 0x3f8   : > { %1089 = vmatmul.f32.gmra.mxu0 %v1050_v55 }
 0x465   : > { %v1116_v57 = vpop.f32.mrf.mxu1 }
 0x46a   : > { %v1122_v63 = vpop.f32.mrf.mxu3 }
 0x46d   : > { %v1087_v28 = vpop.f32.mrf.mxu0 }
 0x46e   : > { %v1117_v61 = vadd.f32 %v1116_v57, %v1087_v28 }
 0x470   : > { %v1132_v1 = vadd.f32 %v1128_v59, %v1117_v61 }
 0x472   : > { %1136 = vst.msk [vmem:[%s1609_s13] sm:$0xff] %vm445_vm2, %v1132_v1  ;;  %v1093_v3 = vpop.f32.mrf.mxu2  ;;  %v1125_v19 = vpop.f32.mrf.mxu3 }
 0x473   : > { %v1123_v47 = vadd.f32 %v1122_v63, %v1093_v3 }
 0x474   : > { %v1119_v6 = vpop.f32.mrf.mxu1 }
 0x475   : > { %v1134_v56 = vadd.f32 %v1130_v5, %v1123_v47  ;;  %v1090_v7 = vpop.f32.mrf.mxu0 }
 0x476   : > { %v1120_v9 = vadd.f32 %v1119_v6, %v1090_v7 }
 0x477   : > { %1138 = vst.msk [vmem:[%s1609_s13 + $0x10] sm:$0xff] %vm445_vm2, %v1134_v56 }
 0x478   : > { %v1133_v58 = vadd.f32 %v1129_v8, %v1120_v9 }
 0x47a   : > { %1137 = vst.msk [vmem:[%s1609_s13 + $0x8] sm:$0xff] %vm445_vm2, %v1133_v58  ;;  %v1096_v10 = vpop.f32.mrf.mxu2 }
 0x47b   : > { %v1126_v12 = vadd.f32 %v1125_v19, %v1096_v10 }
 0x47d   : > { %v1135_v50 = vadd.f32 %v1131_v11, %v1126_v12 }
 0x47f   : > { %1139 = vst.msk [vmem:[%s1609_s13 + $0x18] sm:$0xff] %vm445_vm2, %v1135_v50 }
 0x480 PF: > { %s15_s24 = sadd.s32 1, %s1520_s24   ;;  %s1995_s18 = smov %s1508_s21 }
 0x481   : > { %p12_p11 = scmp.ge.s32.totalorder %s15_s24, 18   ;;  %s1996_s19 = smov %s1512_s22 }
 0x482   : > { %s1997_s20 = smov %s1516_s23  ;;  %s1998_s21 = smov %s2002_s25 }
 0x483   : > { %s1999_s22 = smov %s2006_s26  ;;  %s2000_s23 = smov %s2010_s27 }
 0x484   :  { %14 = sbr.rel (!%p12_p11) target bundleno = 4 (0x4), region = 85 }

</bundles_post_ra>
